<compile_context>
chip_gen: v6e
topology: v6e:2x2x1
jax: 0.10.0
libtpu: 0.0.40
codegen_flags: <defaults>
</compile_context>

<pallas_src>
import jax
import jax.numpy as jnp
from jax.experimental import pallas as pl
from jax.experimental.pallas import tpu as pltpu


def _round_up(v, m):
    return ((v + m - 1) // m) * m


def _pad2d(a, rows, cols):
    return jnp.pad(a, ((0, rows - a.shape[0]), (0, cols - a.shape[1])))


def _sigmoid(z):
    # exp on the EUP; approx reciprocal also on the EUP (frees VPU slots).
    return pl.reciprocal(1.0 + jnp.exp(-z), approx=True)


def sae_kernel(x_ref,
               w1_ref, b1_ref,
               w2_ref, b2_ref,
               w3_ref, b3_ref,
               w4_ref, b4_ref,
               o_ref):
    # x streams as bf16; compute in f32 (weights are f32, MXU accumulates f32).
    x = x_ref[...].astype(jnp.float32)

    h1 = _sigmoid(jnp.dot(x, w1_ref[...], preferred_element_type=jnp.float32)
                  + b1_ref[...])
    h2 = _sigmoid(jnp.dot(h1, w2_ref[...], preferred_element_type=jnp.float32)
                  + b2_ref[...])
    h3 = _sigmoid(jnp.dot(h2, w3_ref[...], preferred_element_type=jnp.float32)
                  + b3_ref[...])
    out = jnp.dot(h3, w4_ref[...], preferred_element_type=jnp.float32) + b4_ref[...]

    o_ref[...] = out.astype(o_ref.dtype)


def sae_forward(x, params, *, batch_tile=512, x_dtype=jnp.bfloat16):
    """x: [B, nb_movies] float32. params: dict of (W, b) per layer with
    W already transposed to (in, out) and b reshaped to (1, out)."""
    B, M = x.shape
    LANE = 128
    Mp = _round_up(M, LANE)   # lane-dense feature axis
    Hp = LANE                 # hidden dims (20 / 10 / 20) padded to one lane tile

    (w1, b1), (w2, b2), (w3, b3), (w4, b4) = (
        params["fc1"], params["fc2"], params["fc3"], params["fc4"])

    # Zero-pad weights / biases.  Padded hidden lanes carry sigmoid(0)=0.5 but
    # cannot leak into real outputs because the *next* layer's padded weight
    # rows (and all padded bias entries / w4 padded columns) are exactly zero.
    w1p = _pad2d(w1, Mp, Hp); b1p = _pad2d(b1, 1, Hp)
    w2p = _pad2d(w2, Hp, Hp); b2p = _pad2d(b2, 1, Hp)
    w3p = _pad2d(w3, Hp, Hp); b3p = _pad2d(b3, 1, Hp)
    w4p = _pad2d(w4, Hp, Mp); b4p = _pad2d(b4, 1, Mp)

    # Batch tile: large to amortize the ~0.35us per-grid-step overhead, capped
    # at the (sublane-rounded) batch, always a multiple of 8.  The batch is
    # zero-padded up to a tile multiple and sliced back afterwards.
    tile = max(8, min(batch_tile, _round_up(B, 8)))
    Bp = _round_up(B, tile)
    xp = _pad2d(x, Bp, Mp).astype(x_dtype)

    grid = (Bp // tile,)

    # Explicit VMEM budget: double-buffered x/out tiles + resident weights with
    # 2x headroom, clamped to [32 MiB, 48 MiB] so it also fits v7x (64 MiB phys).
    itemsize_x = jnp.dtype(x_dtype).itemsize
    x_tile_bytes = tile * Mp * itemsize_x
    o_tile_bytes = tile * Mp * 4
    w_bytes = 4 * (Mp * Hp + Hp * Hp + Hp * Hp + Hp * Mp + 3 * Hp + Mp)
    needed = 2 * (x_tile_bytes + o_tile_bytes) + 2 * w_bytes
    vmem_limit = int(min(max(2 * needed + (4 << 20), 32 << 20), 48 << 20))

    def resident(arr):
        # whole (padded) weight / bias resident in VMEM for every grid step
        return pl.BlockSpec(arr.shape, lambda i: (0, 0))

    in_specs = [
        # x streams over the batch axis.  (pipeline_mode=pl.Buffered(3) could be
        # added here if a trace shows exposed input DMA at very large tiles.)
        pl.BlockSpec((tile, Mp), lambda i: (i, 0)),
        resident(w1p), resident(b1p),
        resident(w2p), resident(b2p),
        resident(w3p), resident(b3p),
        resident(w4p), resident(b4p),
    ]
    out_specs = pl.BlockSpec((tile, Mp), lambda i: (i, 0))

    out = pl.pallas_call(
        sae_kernel,
        out_shape=jax.ShapeDtypeStruct((Bp, Mp), jnp.float32),
        grid_spec=pltpu.PrefetchScalarGridSpec(
            num_scalar_prefetch=0,
            grid=grid,
            in_specs=in_specs,
            out_specs=out_specs,
        ),
        compiler_params=pltpu.CompilerParams(
            dimension_semantics=("parallel",),
            vmem_limit_bytes=vmem_limit,
        ),
    )(xp, w1p, b1p, w2p, b2p, w3p, b3p, w4p, b4p)

    return out[:B, :M]


def init_sae_params(key, nb_movies):
    """Deterministic init mimicking nn.Linear's U(-1/sqrt(fan_in), 1/sqrt(fan_in)).
    Returns weights pre-transposed to (in, out) and biases as (1, out)."""
    dims = [(nb_movies, 20), (20, 10), (10, 20), (20, nb_movies)]
    names = ["fc1", "fc2", "fc3", "fc4"]
    params = {}
    for name, (fan_in, fan_out) in zip(names, dims):
        key, kw, kb = jax.random.split(key, 3)
        bound = 1.0 / jnp.sqrt(fan_in)
        w = jax.random.uniform(kw, (fan_in, fan_out), jnp.float32, -bound, bound)
        b = jax.random.uniform(kb, (1, fan_out), jnp.float32, -bound, bound)
        params[name] = (w, b)
    return params


def sae_reference(x, params):
    """Pure-JAX reference for correctness checking."""
    (w1, b1), (w2, b2), (w3, b3), (w4, b4) = (
        params["fc1"], params["fc2"], params["fc3"], params["fc4"])
    h = jax.nn.sigmoid(x @ w1 + b1)
    h = jax.nn.sigmoid(h @ w2 + b2)
    h = jax.nn.sigmoid(h @ w3 + b3)
    return h @ w4 + b4


if __name__ == "__main__":
    # Small, deterministic synthetic setup: nb_movies plays the role of the
    # dataset-derived value in the original script.
    nb_movies = 50
    batch = 64

    key = jax.random.PRNGKey(0)
    key, kx, kp = jax.random.split(key, 3)

    # ratings-like input (values in [0, 5])
    x = jax.random.uniform(kx, (batch, nb_movies), jnp.float32, 0.0, 5.0)
    params = init_sae_params(kp, nb_movies)

    out = sae_forward(x, params, batch_tile=512, x_dtype=jnp.bfloat16)
    out = jax.block_until_ready(out)

    # Reference uses the same bf16-rounded x the kernel streams from HBM, so
    # the remaining difference is just accumulation order + approx reciprocal.
    x_rounded = x.astype(jnp.bfloat16).astype(jnp.float32)
    ref = sae_reference(x_rounded, params)

    assert out.shape == (batch, nb_movies)
    max_err = float(jnp.max(jnp.abs(out - ref)))
    assert jnp.allclose(out, ref, atol=1e-2, rtol=1e-2), max_err

    print("KERNEL_OK")
</pallas_src>

<mosaic_0001>
module attributes {stable_mosaic.version = 11 : i64} {
  func.func @sae_kernel(%arg0: i32, %arg1: memref<64x128xbf16, #tpu.memory_space<vmem>>, %arg2: memref<128x128xf32, #tpu.memory_space<vmem>>, %arg3: memref<1x128xf32, #tpu.memory_space<vmem>>, %arg4: memref<128x128xf32, #tpu.memory_space<vmem>>, %arg5: memref<1x128xf32, #tpu.memory_space<vmem>>, %arg6: memref<128x128xf32, #tpu.memory_space<vmem>>, %arg7: memref<1x128xf32, #tpu.memory_space<vmem>>, %arg8: memref<128x128xf32, #tpu.memory_space<vmem>>, %arg9: memref<1x128xf32, #tpu.memory_space<vmem>>, %arg10: memref<64x128xf32, #tpu.memory_space<vmem>>) attributes {dimension_semantics = [#tpu.dimension_semantics<parallel>], iteration_bounds = array<i64: 1>, scalar_prefetch = 0 : i64, scratch_operands = 0 : i64, tpu.core_type = #tpu.core_type<tc>, window_params = [{transform_indices = @transform_0, window_bounds = array<i64: 64, 128>}, {pipeline_mode = #tpu.pipeline_mode<synchronous>, transform_indices = @transform_1, window_bounds = array<i64: 128, 128>}, {pipeline_mode = #tpu.pipeline_mode<synchronous>, transform_indices = @transform_2, window_bounds = array<i64: 1, 128>}, {pipeline_mode = #tpu.pipeline_mode<synchronous>, transform_indices = @transform_3, window_bounds = array<i64: 128, 128>}, {pipeline_mode = #tpu.pipeline_mode<synchronous>, transform_indices = @transform_4, window_bounds = array<i64: 1, 128>}, {pipeline_mode = #tpu.pipeline_mode<synchronous>, transform_indices = @transform_5, window_bounds = array<i64: 128, 128>}, {pipeline_mode = #tpu.pipeline_mode<synchronous>, transform_indices = @transform_6, window_bounds = array<i64: 1, 128>}, {pipeline_mode = #tpu.pipeline_mode<synchronous>, transform_indices = @transform_7, window_bounds = array<i64: 128, 128>}, {pipeline_mode = #tpu.pipeline_mode<synchronous>, transform_indices = @transform_8, window_bounds = array<i64: 1, 128>}, {transform_indices = @transform_9, window_bounds = array<i64: 64, 128>}]} {
    %c0 = arith.constant 0 : index
    %c0_0 = arith.constant 0 : index
    %0 = vector.load %arg1[%c0, %c0_0] : memref<64x128xbf16, #tpu.memory_space<vmem>>, vector<64x128xbf16>
    %1 = arith.extf %0 : vector<64x128xbf16> to vector<64x128xf32>
    %c0_1 = arith.constant 0 : index
    %c0_2 = arith.constant 0 : index
    %2 = vector.load %arg2[%c0_1, %c0_2] : memref<128x128xf32, #tpu.memory_space<vmem>>, vector<128x128xf32>
    %cst = arith.constant dense<0.000000e+00> : vector<64x128xf32>
    %3 = tpu.matmul %1, %2, %cst {dimension_numbers = #tpu.dot_dimension_numbers<[1], [0], [0], [1], [0, 0, 1, 1], [], []>} : vector<64x128xf32>, vector<128x128xf32>, vector<64x128xf32> -> vector<64x128xf32>
    %c0_3 = arith.constant 0 : index
    %c0_4 = arith.constant 0 : index
    %4 = vector.load %arg3[%c0_3, %c0_4] : memref<1x128xf32, #tpu.memory_space<vmem>>, vector<1x128xf32>
    %5 = vector.broadcast %4 : vector<1x128xf32> to vector<64x128xf32>
    %6 = arith.addf %3, %5 : vector<64x128xf32>
    %cst_5 = arith.constant 0.000000e+00 : f32
    %7 = vector.broadcast %cst_5 : f32 to vector<64x128xf32>
    %8 = arith.subf %7, %6 : vector<64x128xf32>
    %9 = math.exp %8 : vector<64x128xf32>
    %cst_6 = arith.constant 1.000000e+00 : f32
    %10 = vector.broadcast %cst_6 : f32 to vector<64x128xf32>
    %11 = arith.addf %10, %9 : vector<64x128xf32>
    %12 = tpu.reciprocal %11 {approx = true} : vector<64x128xf32> -> vector<64x128xf32>
    %c0_7 = arith.constant 0 : index
    %c0_8 = arith.constant 0 : index
    %13 = vector.load %arg4[%c0_7, %c0_8] : memref<128x128xf32, #tpu.memory_space<vmem>>, vector<128x128xf32>
    %cst_9 = arith.constant dense<0.000000e+00> : vector<64x128xf32>
    %14 = tpu.matmul %12, %13, %cst_9 {dimension_numbers = #tpu.dot_dimension_numbers<[1], [0], [0], [1], [0, 0, 1, 1], [], []>} : vector<64x128xf32>, vector<128x128xf32>, vector<64x128xf32> -> vector<64x128xf32>
    %c0_10 = arith.constant 0 : index
    %c0_11 = arith.constant 0 : index
    %15 = vector.load %arg5[%c0_10, %c0_11] : memref<1x128xf32, #tpu.memory_space<vmem>>, vector<1x128xf32>
    %16 = vector.broadcast %15 : vector<1x128xf32> to vector<64x128xf32>
    %17 = arith.addf %14, %16 : vector<64x128xf32>
    %cst_12 = arith.constant 0.000000e+00 : f32
    %18 = vector.broadcast %cst_12 : f32 to vector<64x128xf32>
    %19 = arith.subf %18, %17 : vector<64x128xf32>
    %20 = math.exp %19 : vector<64x128xf32>
    %cst_13 = arith.constant 1.000000e+00 : f32
    %21 = vector.broadcast %cst_13 : f32 to vector<64x128xf32>
    %22 = arith.addf %21, %20 : vector<64x128xf32>
    %23 = tpu.reciprocal %22 {approx = true} : vector<64x128xf32> -> vector<64x128xf32>
    %c0_14 = arith.constant 0 : index
    %c0_15 = arith.constant 0 : index
    %24 = vector.load %arg6[%c0_14, %c0_15] : memref<128x128xf32, #tpu.memory_space<vmem>>, vector<128x128xf32>
    %cst_16 = arith.constant dense<0.000000e+00> : vector<64x128xf32>
    %25 = tpu.matmul %23, %24, %cst_16 {dimension_numbers = #tpu.dot_dimension_numbers<[1], [0], [0], [1], [0, 0, 1, 1], [], []>} : vector<64x128xf32>, vector<128x128xf32>, vector<64x128xf32> -> vector<64x128xf32>
    %c0_17 = arith.constant 0 : index
    %c0_18 = arith.constant 0 : index
    %26 = vector.load %arg7[%c0_17, %c0_18] : memref<1x128xf32, #tpu.memory_space<vmem>>, vector<1x128xf32>
    %27 = vector.broadcast %26 : vector<1x128xf32> to vector<64x128xf32>
    %28 = arith.addf %25, %27 : vector<64x128xf32>
    %cst_19 = arith.constant 0.000000e+00 : f32
    %29 = vector.broadcast %cst_19 : f32 to vector<64x128xf32>
    %30 = arith.subf %29, %28 : vector<64x128xf32>
    %31 = math.exp %30 : vector<64x128xf32>
    %cst_20 = arith.constant 1.000000e+00 : f32
    %32 = vector.broadcast %cst_20 : f32 to vector<64x128xf32>
    %33 = arith.addf %32, %31 : vector<64x128xf32>
    %34 = tpu.reciprocal %33 {approx = true} : vector<64x128xf32> -> vector<64x128xf32>
    %c0_21 = arith.constant 0 : index
    %c0_22 = arith.constant 0 : index
    %35 = vector.load %arg8[%c0_21, %c0_22] : memref<128x128xf32, #tpu.memory_space<vmem>>, vector<128x128xf32>
    %cst_23 = arith.constant dense<0.000000e+00> : vector<64x128xf32>
    %36 = tpu.matmul %34, %35, %cst_23 {dimension_numbers = #tpu.dot_dimension_numbers<[1], [0], [0], [1], [0, 0, 1, 1], [], []>} : vector<64x128xf32>, vector<128x128xf32>, vector<64x128xf32> -> vector<64x128xf32>
    %c0_24 = arith.constant 0 : index
    %c0_25 = arith.constant 0 : index
    %37 = vector.load %arg9[%c0_24, %c0_25] : memref<1x128xf32, #tpu.memory_space<vmem>>, vector<1x128xf32>
    %38 = vector.broadcast %37 : vector<1x128xf32> to vector<64x128xf32>
    %39 = arith.addf %36, %38 : vector<64x128xf32>
    %c0_26 = arith.constant 0 : index
    %c0_27 = arith.constant 0 : index
    %40 = vector.load %arg10[%c0_26, %c0_27] : memref<64x128xf32, #tpu.memory_space<vmem>>, vector<64x128xf32>
    tpu.vector_store %arg10[%c0_26, %c0_27], %39 {strides = array<i32>} : memref<64x128xf32, #tpu.memory_space<vmem>>, vector<64x128xf32>,
    return
  }
  func.func @transform_0(%arg0: i32) -> (i32, i32) {
    %c0_i32 = arith.constant 0 : i32
    %c0_i32_0 = arith.constant 0 : i32
    return %arg0, %c0_i32 : i32, i32
  }
  func.func @transform_1(%arg0: i32) -> (i32, i32) {
    %c0_i32 = arith.constant 0 : i32
    %c0_i32_0 = arith.constant 0 : i32
    %c0_i32_1 = arith.constant 0 : i32
    return %c0_i32, %c0_i32_0 : i32, i32
  }
  func.func @transform_2(%arg0: i32) -> (i32, i32) {
    %c0_i32 = arith.constant 0 : i32
    %c0_i32_0 = arith.constant 0 : i32
    %c0_i32_1 = arith.constant 0 : i32
    return %c0_i32, %c0_i32_0 : i32, i32
  }
  func.func @transform_3(%arg0: i32) -> (i32, i32) {
    %c0_i32 = arith.constant 0 : i32
    %c0_i32_0 = arith.constant 0 : i32
    %c0_i32_1 = arith.constant 0 : i32
    return %c0_i32, %c0_i32_0 : i32, i32
  }
  func.func @transform_4(%arg0: i32) -> (i32, i32) {
    %c0_i32 = arith.constant 0 : i32
    %c0_i32_0 = arith.constant 0 : i32
    %c0_i32_1 = arith.constant 0 : i32
    return %c0_i32, %c0_i32_0 : i32, i32
  }
  func.func @transform_5(%arg0: i32) -> (i32, i32) {
    %c0_i32 = arith.constant 0 : i32
    %c0_i32_0 = arith.constant 0 : i32
    %c0_i32_1 = arith.constant 0 : i32
    return %c0_i32, %c0_i32_0 : i32, i32
  }
  func.func @transform_6(%arg0: i32) -> (i32, i32) {
    %c0_i32 = arith.constant 0 : i32
    %c0_i32_0 = arith.constant 0 : i32
    %c0_i32_1 = arith.constant 0 : i32
    return %c0_i32, %c0_i32_0 : i32, i32
  }
  func.func @transform_7(%arg0: i32) -> (i32, i32) {
    %c0_i32 = arith.constant 0 : i32
    %c0_i32_0 = arith.constant 0 : i32
    %c0_i32_1 = arith.constant 0 : i32
    return %c0_i32, %c0_i32_0 : i32, i32
  }
  func.func @transform_8(%arg0: i32) -> (i32, i32) {
    %c0_i32 = arith.constant 0 : i32
    %c0_i32_0 = arith.constant 0 : i32
    %c0_i32_1 = arith.constant 0 : i32
    return %c0_i32, %c0_i32_0 : i32, i32
  }
  func.func @transform_9(%arg0: i32) -> (i32, i32) {
    %c0_i32 = arith.constant 0 : i32
    %c0_i32_0 = arith.constant 0 : i32
    return %arg0, %c0_i32 : i32, i32
  }
}

</mosaic_0001>

<bundles_post_ra>
// kernel: tpu_custom_call.1
= control target key start
LH: loop header
LB: loop body
LE: loop exit
PB: predicated region body
PF: predicated region fallthrough
CT: control target
= control target key end

     0   :  { %14 = vsyncpa [#allocation3], 0  ;;  %s1410_s0 = inlined_call_operand.hbm [shape: bf16[64,128], index: 0, kind: input, shape index: {}]   ;;  %s1411_s1 = inlined_call_operand.hbm [shape: f32[128,128], index: 1, kind: input, shape index: {}]   ;;  %s1412_s2 = inlined_call_operand.vmem [shape: f32[1,128], index: 2, kind: input, shape index: {}]   ;;  %s1413_s3 = inlined_call_operand.hbm [shape: f32[128,128], index: 3, kind: input, shape index: {}]   ;;  %s1414_s4 = inlined_call_operand.vmem [shape: f32[1,128], index: 4, kind: input, shape index: {}]   ;;  %s1415_s5 = inlined_call_operand.hbm [shape: f32[128,128], index: 5, kind: input, shape index: {}]   ;;  %s1416_s6 = inlined_call_operand.vmem [shape: f32[1,128], index: 6, kind: input, shape index: {}]   ;;  %s1417_s7 = inlined_call_operand.hbm [shape: f32[128,128], index: 7, kind: input, shape index: {}]   ;;  %s1418_s8 = inlined_call_operand.vmem [shape: f32[1,128], index: 8, kind: input, shape index: {}]   ;;  %s1419_s9 = inlined_call_operand.hbm [shape: f32[64,128], index: 9, kind: output, shape index: {}]  }
   0x1   :  { %15 = vsyncpa [#allocation6], 0 }
   0x2   :  { %16 = vsyncpa [#allocation9], 0 }
   0x3   :  { %17 = vsyncpa [#allocation4], 0  ;;  %s1305_s30 = smov [#allocation5]  }
   0x4   :  { %s35_s10 = sshll.u32 %s1305_s30, 4  ;;  %s36_s10 = int_to_ptr.vmem [resolvable:$true] %s35_s10 }
   0x5   :  { %s1185_s11 = scalar_lea.vmem %s36_s10, 2048  ;;  %p1190_p1 = scmp.lt.s32.totalorder %s36_s10, %s36_s10 }
   0x6   :  { %p1186_p0 = scmp.ne.s32.totalorder %s36_s10, %s1185_s11  ;;  %p1191_p2 = scmp.lt.s32.totalorder %s1185_s11, %s1185_s11 }
   0x8   :  { %p1192_p3 = por %p1191_p2, %p1190_p1 }
   0xa   :  { %p1193_p4 = pnand %p1192_p3, %p1186_p0 }
   0xc   :  { %1196 = shalt.err (!%p1193_p4)
}
   0xd   :  { %s1306_s12 = smov 128   ;;  %s1307_s13 = smov 8  }
   0xe   :  { %41 = dma.hbm_to_vmem [thread:$0]  %s1411_s1, 2048, %s36_s10, [#allocation6], %s1306_s12, %s1306_s12, %s1307_s13  }
   0xf   :  { %s1308_s16 = smov [#allocation8]   ;;  %s1309_s18 = smov [#allocation2]  }
  0x10   :  { %s63_s17 = sshll.u32 %s1308_s16, 4  ;;  %s23_s19 = sshll.u32 %s1309_s18, 4  ;;  %s64_s17 = int_to_ptr.vmem [resolvable:$true] %s63_s17  ;;  %s24_s19 = int_to_ptr.vmem [resolvable:$true] %s23_s19 }
  0x11   :  { %s1205_s20 = scalar_lea.vmem %s64_s17, 2048  ;;  %p1210_p6 = scmp.lt.s32.totalorder %s64_s17, %s64_s17 }
  0x12   :  { %p1206_p5 = scmp.ne.s32.totalorder %s64_s17, %s1205_s20  ;;  %p1211_p7 = scmp.lt.s32.totalorder %s1205_s20, %s1205_s20 }
  0x14   :  { %p1212_p8 = por %p1211_p7, %p1210_p6 }
  0x16   :  { %p1213_p9 = pnand %p1212_p8, %p1206_p5 }
  0x18   :  { %1216 = shalt.err (!%p1213_p9)
}
  0x19   :  { %69 = dma.hbm_to_vmem [thread:$0]  %s1415_s5, 2048, %s64_s17, [#allocation9], %s1306_s12, %s1306_s12, %s1307_s13  }
  0x1a   :  { %s1225_s1 = scalar_lea.vmem %s24_s19, 512  ;;  %p1230_p11 = scmp.lt.s32.totalorder %s24_s19, %s24_s19 }
  0x1b   :  { %p1226_p10 = scmp.ne.s32.totalorder %s24_s19, %s1225_s1  ;;  %p1231_p12 = scmp.lt.s32.totalorder %s1225_s1, %s1225_s1 }
  0x1d   :  { %p1232_p13 = por %p1231_p12, %p1230_p11 }
  0x1f   :  { %p1233_p0 = pnand %p1232_p13, %p1226_p10 }
  0x21   :  { %1236 = shalt.err (!%p1233_p0)
}
  0x22   :  { %s1310_s23 = smov 64   ;;  %s1311_s24 = smov 4  }
  0x23   :  { %29 = dma.hbm_to_vmem [thread:$0]  %s1410_s0, 512, %s24_s19, [#allocation3], %s1310_s23, %s1310_s23, %s1311_s24  }
  0x24   :  { %s1312_s27 = smov [#allocation7]   ;;  %s1313_s29 = smov [#allocation10]  }
  0x25   :  { %s49_s28 = sshll.u32 %s1312_s27, 4  ;;  %s77_s30 = sshll.u32 %s1313_s29, 4  ;;  %s50_s28 = int_to_ptr.vmem [resolvable:$true] %s49_s28  ;;  %s78_s30 = int_to_ptr.vmem [resolvable:$true] %s77_s30 }
  0x26   :  { %s1245_s5 = scalar_lea.vmem %s50_s28, 2048  ;;  %p1250_p2 = scmp.lt.s32.totalorder %s50_s28, %s50_s28 }
  0x27   :  { %p1246_p1 = scmp.ne.s32.totalorder %s50_s28, %s1245_s5  ;;  %p1251_p3 = scmp.lt.s32.totalorder %s1245_s5, %s1245_s5 }
  0x29   :  { %p1252_p4 = por %p1251_p3, %p1250_p2 }
  0x2b   :  { %p1253_p5 = pnand %p1252_p4, %p1246_p1 }
  0x2d   :  { %1256 = shalt.err (!%p1253_p5)
}
  0x2e   :  { %55 = dma.hbm_to_vmem [thread:$0]  %s1413_s3, 2048, %s50_s28, [#allocation6], %s1306_s12, %s1306_s12, %s1307_s13  }
  0x2f   :  { %s1265_s0 = scalar_lea.vmem %s78_s30, 2048  ;;  %p1270_p7 = scmp.lt.s32.totalorder %s78_s30, %s78_s30 }
  0x30   :  { %p1266_p6 = scmp.ne.s32.totalorder %s78_s30, %s1265_s0  ;;  %p1271_p8 = scmp.lt.s32.totalorder %s1265_s0, %s1265_s0 }
  0x32   :  { %p1272_p9 = por %p1271_p8, %p1270_p7 }
  0x34   :  { %p1273_p10 = pnand %p1272_p9, %p1266_p6 }
  0x36   :  { %1276 = shalt.err (!%p1273_p10)
}
  0x37   :  { %83 = dma.hbm_to_vmem [thread:$0]  %s1417_s7, 2048, %s78_s30, [#allocation9], %s1306_s12, %s1306_s12, %s1307_s13  }
  0x38   :  { %1297 = dma.done.wait [#allocation3], 512  }
  0x39   :  { %1298 = vsyncadd [#allocation3], 4294966784 }
  0x3a   :  { %1299 = dma.done.wait [#allocation6], 4096  }
  0x3b   :  { %1300 = vsyncadd [#allocation6], 4294963200 }
  0x3c   :  { %1301 = dma.done.wait [#allocation9], 4096  }
  0x3d   :  { %1302 = vsyncadd [#allocation9], 4294963200  ;;  %v132_v0 = vld [vmem:[#allocation5 + $0x78] sm:$0xff]  ;;  %v131_v1 = vld [vmem:[#allocation5 + $0x70] sm:$0xff]  ;;  %s1314_s19 = smov [#allocation11]  }
  0x3e   :  { %895 = vmatprep.subr.mxu0 %v132_v0  ;;  %v130_v2 = vld [vmem:[#allocation5 + $0x68] sm:$0xff]  ;;  %v129_v3 = vld [vmem:[#allocation5 + $0x60] sm:$0xff]  ;;  %v128_v5 = vld [vmem:[#allocation5 + $0x58] sm:$0xff] }
  0x3f   :  { %896 = vmatpush3.msra.mxu0 %v132_v0  ;;  %v781_v4 = vld [vmem:[#allocation2] sm:$0xff]   ;;  %v127_v7 = vld [vmem:[#allocation5 + $0x50] sm:$0xff]  ;;  %v126_v8 = vld [vmem:[#allocation5 + $0x48] sm:$0xff] }
  0x40   :  { %897 = vmatprep.subr.mxu0 %v131_v1  ;;  %v782_v6 = vunpack.c.l.bf16 %v781_v4  ;;  %v125_v9 = vld [vmem:[#allocation5 + $0x40] sm:$0xff]  ;;  %v124_v10 = vld [vmem:[#allocation5 + $0x38] sm:$0xff]  ;;  %v123_v11 = vld [vmem:[#allocation5 + $0x30] sm:$0xff]  ;;  %v783_v19 = vunpack.c.h.bf16 %v781_v4 }
  0x41   :  { %898 = vmatpush3.msra.mxu0 %v131_v1  ;;  %v122_v12 = vld [vmem:[#allocation5 + $0x28] sm:$0xff]  ;;  %v121_v13 = vld [vmem:[#allocation5 + $0x20] sm:$0xff]  ;;  %v120_v14 = vld [vmem:[#allocation5 + $0x18] sm:$0xff] }
  0x42   :  { %899 = vmatprep.subr.mxu0 %v130_v2  ;;  %927 = vmatprep.mubr.f32.mxu0 %v782_v6  ;;  %v119_v15 = vld [vmem:[#allocation5 + $0x10] sm:$0xff]  ;;  %v118_v16 = vld [vmem:[#allocation5 + $0x8] sm:$0xff]  ;;  %v117_v18 = vld [vmem:[#allocation5] sm:$0xff] }
  0x43   :  { %900 = vmatpush3.msra.mxu0 %v130_v2  ;;  %v796_v17 = vld [vmem:[#allocation2 + $0x8] sm:$0xff]   ;;  %v797_v21 = vld [vmem:[#allocation2 + $0x10] sm:$0xff]   ;;  %v798_v24 = vld [vmem:[#allocation2 + $0x18] sm:$0xff]  }
  0x44   :  { %901 = vmatprep.subr.mxu0 %v129_v3  ;;  %v786_v20 = vunpack.c.l.bf16 %v796_v17  ;;  %v787_v22 = vunpack.c.h.bf16 %v796_v17  ;;  %v790_v23 = vunpack.c.l.bf16 %v797_v21  ;;  %v791_v25 = vunpack.c.h.bf16 %v797_v21  ;;  %v300_v28 = vld [vmem:[#allocation7 + $0x78] sm:$0xff]  ;;  %v299_v29 = vld [vmem:[#allocation7 + $0x70] sm:$0xff]  ;;  %v298_v30 = vld [vmem:[#allocation7 + $0x68] sm:$0xff] }
  0x45   :  { %902 = vmatpush3.msra.mxu0 %v129_v3  ;;  %v794_v26 = vunpack.c.l.bf16 %v798_v24  ;;  %v795_v27 = vunpack.c.h.bf16 %v798_v24  ;;  %939 = vmatprep.subr.mxu1 %v300_v28  ;;  %v297_v31 = vld [vmem:[#allocation7 + $0x60] sm:$0xff]  ;;  %v296_v32 = vld [vmem:[#allocation7 + $0x58] sm:$0xff]  ;;  %v295_v33 = vld [vmem:[#allocation7 + $0x50] sm:$0xff] }
  0x46   :  { %903 = vmatprep.subr.mxu0 %v128_v5  ;;  %940 = vmatpush3.msra.mxu1 %v300_v28  ;;  %v294_v34 = vld [vmem:[#allocation7 + $0x48] sm:$0xff]  ;;  %v293_v35 = vld [vmem:[#allocation7 + $0x40] sm:$0xff]  ;;  %v292_v36 = vld [vmem:[#allocation7 + $0x38] sm:$0xff] }
  0x47   :  { %904 = vmatpush3.msra.mxu0 %v128_v5  ;;  %941 = vmatprep.subr.mxu1 %v299_v29  ;;  %v291_v37 = vld [vmem:[#allocation7 + $0x30] sm:$0xff]  ;;  %v290_v38 = vld [vmem:[#allocation7 + $0x28] sm:$0xff]  ;;  %v289_v39 = vld [vmem:[#allocation7 + $0x20] sm:$0xff] }
  0x48   :  { %905 = vmatprep.subr.mxu0 %v127_v7  ;;  %942 = vmatpush3.msra.mxu1 %v299_v29  ;;  %v288_v40 = vld [vmem:[#allocation7 + $0x18] sm:$0xff]  ;;  %v287_v41 = vld [vmem:[#allocation7 + $0x10] sm:$0xff]  ;;  %v286_v42 = vld [vmem:[#allocation7 + $0x8] sm:$0xff] }
  0x49   :  { %906 = vmatpush3.msra.mxu0 %v127_v7  ;;  %943 = vmatprep.subr.mxu1 %v298_v30  ;;  %v285_v43 = vld [vmem:[#allocation7] sm:$0xff] }
  0x4a   :  { %907 = vmatprep.subr.mxu0 %v126_v8  ;;  %944 = vmatpush3.msra.mxu1 %v298_v30  ;;  %v776_v44 = vld [vmem:[%s1412_s2] ss:$0 sm:$0xff] }
  0x4b   :  { %908 = vmatpush3.msra.mxu0 %v126_v8  ;;  %945 = vmatprep.subr.mxu1 %v297_v31 }
  0x4c   :  { %909 = vmatprep.subr.mxu0 %v125_v9  ;;  %946 = vmatpush3.msra.mxu1 %v297_v31 }
  0x4d   :  { %910 = vmatpush3.msra.mxu0 %v125_v9  ;;  %947 = vmatprep.subr.mxu1 %v296_v32 }
  0x4e   :  { %911 = vmatprep.subr.mxu0 %v124_v10  ;;  %948 = vmatpush3.msra.mxu1 %v296_v32 }
  0x4f   :  { %912 = vmatpush3.msra.mxu0 %v124_v10  ;;  %949 = vmatprep.subr.mxu1 %v295_v33 }
  0x50   :  { %913 = vmatprep.subr.mxu0 %v123_v11  ;;  %950 = vmatpush3.msra.mxu1 %v295_v33 }
  0x51   :  { %914 = vmatpush3.msra.mxu0 %v123_v11  ;;  %951 = vmatprep.subr.mxu1 %v294_v34 }
  0x52   :  { %915 = vmatprep.subr.mxu0 %v122_v12  ;;  %952 = vmatpush3.msra.mxu1 %v294_v34 }
  0x53   :  { %916 = vmatpush3.msra.mxu0 %v122_v12  ;;  %953 = vmatprep.subr.mxu1 %v293_v35 }
  0x54   :  { %917 = vmatprep.subr.mxu0 %v121_v13  ;;  %954 = vmatpush3.msra.mxu1 %v293_v35 }
  0x55   :  { %918 = vmatpush3.msra.mxu0 %v121_v13  ;;  %955 = vmatprep.subr.mxu1 %v292_v36 }
  0x56   :  { %919 = vmatprep.subr.mxu0 %v120_v14  ;;  %956 = vmatpush3.msra.mxu1 %v292_v36 }
  0x57   :  { %920 = vmatpush3.msra.mxu0 %v120_v14  ;;  %957 = vmatprep.subr.mxu1 %v291_v37 }
  0x58   :  { %921 = vmatprep.subr.mxu0 %v119_v15  ;;  %958 = vmatpush3.msra.mxu1 %v291_v37  ;;  %v468_v37 = vld [vmem:[#allocation8 + $0x78] sm:$0xff] }
  0x59   :  { %922 = vmatpush3.msra.mxu0 %v119_v15  ;;  %959 = vmatprep.subr.mxu1 %v290_v38 }
  0x5a   :  { %923 = vmatprep.subr.mxu0 %v118_v16  ;;  %960 = vmatpush3.msra.mxu1 %v290_v38  ;;  %v467_v38 = vld [vmem:[#allocation8 + $0x70] sm:$0xff] }
  0x5b   :  { %924 = vmatpush3.msra.mxu0 %v118_v16  ;;  %961 = vmatprep.subr.mxu1 %v289_v39 }
  0x5c   :  { %925 = vmatprep.subr.mxu0 %v117_v18  ;;  %962 = vmatpush3.msra.mxu1 %v289_v39  ;;  %v466_v39 = vld [vmem:[#allocation8 + $0x68] sm:$0xff] }
  0x5d   :  { %926 = vmatpush3.msra.mxu0 %v117_v18  ;;  %963 = vmatprep.subr.mxu1 %v288_v40 }
  0x5e   :  { %928 = vmatmul.mubr.f32.vlgmr.msra.gmra.mxu0 %v783_v19  ;;  %964 = vmatpush3.msra.mxu1 %v288_v40  ;;  %v465_v40 = vld [vmem:[#allocation8 + $0x60] sm:$0xff] }
  0x5f   :  { %930 = vmatprep.mubr.f32.mxu0 %v786_v20  ;;  %965 = vmatprep.subr.mxu1 %v287_v41 }
  0x60   :  { %966 = vmatpush3.msra.mxu1 %v287_v41  ;;  %983 = vmatprep.subr.mxu0 %v468_v37  ;;  %v464_v41 = vld [vmem:[#allocation8 + $0x58] sm:$0xff] }
  0x61   :  { %967 = vmatprep.subr.mxu1 %v286_v42  ;;  %984 = vmatpush3.msra.mxu0 %v468_v37 }
  0x62   :  { %931 = vmatmul.mubr.f32.gmra.mxu0 %v787_v22  ;;  %968 = vmatpush3.msra.mxu1 %v286_v42  ;;  %v463_v42 = vld [vmem:[#allocation8 + $0x50] sm:$0xff] }
  0x63   :  { %933 = vmatprep.mubr.f32.mxu0 %v790_v23  ;;  %969 = vmatprep.subr.mxu1 %v285_v43 }
  0x64   :  { %970 = vmatpush3.msra.mxu1 %v285_v43  ;;  %985 = vmatprep.subr.mxu0 %v467_v38  ;;  %v462_v43 = vld [vmem:[#allocation8 + $0x48] sm:$0xff] }
  0x65   :  { %986 = vmatpush3.msra.mxu0 %v467_v38 }
  0x66   :  { %934 = vmatmul.mubr.f32.gmra.mxu0 %v791_v25  ;;  %987 = vmatprep.subr.mxu0 %v466_v39 }
  0x67   :  { %936 = vmatprep.mubr.f32.mxu0 %v794_v26  ;;  %988 = vmatpush3.msra.mxu0 %v466_v39 }
  0x68   :  { %989 = vmatprep.subr.mxu0 %v465_v40 }
  0x69   :  { %990 = vmatpush3.msra.mxu0 %v465_v40 }
  0x6a   :  { %937 = vmatmul.mubr.f32.gmra.mxu0 %v795_v27  ;;  %991 = vmatprep.subr.mxu0 %v464_v41 }
  0x6b   :  { %992 = vmatpush3.msra.mxu0 %v464_v41 }
  0x6c   :  { %993 = vmatprep.subr.mxu0 %v463_v42 }
  0x6d   :  { %994 = vmatpush3.msra.mxu0 %v463_v42 }
  0x6e   :  { %995 = vmatprep.subr.mxu0 %v462_v43 }
  0x6f   :  { %996 = vmatpush3.msra.mxu0 %v462_v43 }
 0x11e   :  { %v929_v45 = vpop.f32.mrf.mxu0 }
 0x11f   :  { %v212_v46 = vadd.f32 %v929_v45, %v776_v44  ;;  %v460_v45 = vld [vmem:[#allocation8 + $0x38] sm:$0xff] }
 0x120   :  { %v206_v47 = vpop.f32.mrf.mxu0 }
 0x121   :  { %v246_v48 = vsub.f32 0.0, %v212_v46  ;;  %v207_v49 = vadd.f32 %v776_v44, %v206_v47  ;;  %v459_v46 = vld [vmem:[#allocation8 + $0x30] sm:$0xff]  ;;  %v458_v47 = vld [vmem:[#allocation8 + $0x28] sm:$0xff] }
 0x122   :  { %v932_v50 = vpop.f32.mrf.mxu0 }
 0x123   :  { %v255_v51 = vmul.f32 1.442695, %v246_v48  ;;  %v245_v52 = vsub.f32 0.0, %v207_v49  ;;  %v222_v53 = vadd.f32 %v932_v50, %v776_v44  ;;  %v457_v48 = vld [vmem:[#allocation8 + $0x20] sm:$0xff]  ;;  %v456_v49 = vld [vmem:[#allocation8 + $0x18] sm:$0xff]  ;;  %v455_v50 = vld [vmem:[#allocation8 + $0x10] sm:$0xff] }
 0x124   :  { %v216_v54 = vpop.f32.mrf.mxu0 }
 0x125   :  { %1081 = vpow2.f32 %v255_v51  ;;  %v253_v55 = vmul.f32 1.442695, %v245_v52  ;;  %v248_v56 = vsub.f32 0.0, %v222_v53  ;;  %v217_v57 = vadd.f32 %v776_v44, %v216_v54  ;;  %v454_v51 = vld [vmem:[#allocation8 + $0x8] sm:$0xff]  ;;  %v453_v52 = vld [vmem:[#allocation8] sm:$0xff] }
 0x126   :  { %v935_v58 = vpop.f32.mrf.mxu0  ;;  %v777_v53 = vld [vmem:[%s1414_s4] ss:$0 sm:$0xff] }
 0x127   :  { %1083 = vpow2.f32 %v253_v55  ;;  %v259_v59 = vmul.f32 1.442695, %v248_v56  ;;  %v247_v60 = vsub.f32 0.0, %v217_v57  ;;  %v232_v61 = vadd.f32 %v935_v58, %v776_v44 }
 0x128   :  { %v226_v62 = vpop.f32.mrf.mxu0 }
 0x129   :  { %1085 = vpow2.f32 %v259_v59  ;;  %v257_v63 = vmul.f32 1.442695, %v247_v60  ;;  %v250_v0 = vsub.f32 0.0, %v232_v61  ;;  %v227_v1 = vadd.f32 %v776_v44, %v226_v62 }
 0x12a   :  { %v938_v2 = vpop.f32.mrf.mxu0 }
 0x12b   :  { %1087 = vpow2.f32 %v257_v63  ;;  %v263_v3 = vmul.f32 1.442695, %v250_v0  ;;  %v249_v4 = vsub.f32 0.0, %v227_v1  ;;  %v242_v5 = vadd.f32 %v938_v2, %v776_v44 }
 0x12c   :  { %v236_v6 = vpop.f32.mrf.mxu0 }
 0x12d   :  { %1089 = vpow2.f32 %v263_v3  ;;  %v261_v7 = vmul.f32 1.442695, %v249_v4  ;;  %v252_v8 = vsub.f32 0.0, %v242_v5  ;;  %v237_v9 = vadd.f32 %v776_v44, %v236_v6  ;;  %v461_v44 = vld [vmem:[#allocation8 + $0x40] sm:$0xff] }
 0x12e   :  { %997 = vmatprep.subr.mxu0 %v461_v44 }
 0x12f   :  { %1091 = vpow2.f32 %v261_v7  ;;  %v267_v10 = vmul.f32 1.442695, %v252_v8  ;;  %v251_v11 = vsub.f32 0.0, %v237_v9  ;;  %998 = vmatpush3.msra.mxu0 %v461_v44 }
 0x130   :  { %999 = vmatprep.subr.mxu0 %v460_v45 }
 0x131   :  { %1093 = vpow2.f32 %v267_v10  ;;  %v265_v12 = vmul.f32 1.442695, %v251_v11  ;;  %1000 = vmatpush3.msra.mxu0 %v460_v45 }
 0x132   :  { %v1082_v13 = vpop.eup %1081  ;;  %1001 = vmatprep.subr.mxu0 %v459_v46 }
 0x133   :  { %1095 = vpow2.f32 %v265_v12  ;;  %v270_v15 = vadd.f32 1.0, %v1082_v13  ;;  %1002 = vmatpush3.msra.mxu0 %v459_v46  ;;  %v636_v46 = vld [vmem:[#allocation10 + $0x78] sm:$0xff] }
 0x134   :  { %v1084_v14 = vpop.eup %1083  ;;  %1003 = vmatprep.subr.mxu0 %v458_v47  ;;  %1027 = vmatprep.subr.mxu1 %v636_v46 }
 0x135   :  { %v269_v16 = vadd.f32 1.0, %v1084_v14  ;;  %1004 = vmatpush3.msra.mxu0 %v458_v47  ;;  %v635_v47 = vld [vmem:[#allocation10 + $0x70] sm:$0xff] }
 0x136   :  { %v1086_v17 = vpop.eup %1085  ;;  %1005 = vmatprep.subr.mxu0 %v457_v48 }
 0x137   :  { %1097 = vrcp.f32 %v269_v16  ;;  %v272_v19 = vadd.f32 1.0, %v1086_v17  ;;  %1006 = vmatpush3.msra.mxu0 %v457_v48  ;;  %v634_v48 = vld [vmem:[#allocation10 + $0x68] sm:$0xff] }
 0x138   :  { %v1088_v18 = vpop.eup %1087  ;;  %1099 = vrcp.f32 %v270_v15  ;;  %1007 = vmatprep.subr.mxu0 %v456_v49 }
 0x139   :  { %v271_v20 = vadd.f32 1.0, %v1088_v18  ;;  %1008 = vmatpush3.msra.mxu0 %v456_v49  ;;  %v633_v49 = vld [vmem:[#allocation10 + $0x60] sm:$0xff] }
 0x13a   :  { %v1090_v21 = vpop.eup %1089  ;;  %1009 = vmatprep.subr.mxu0 %v455_v50 }
 0x13b   :  { %1101 = vrcp.f32 %v271_v20  ;;  %v274_v23 = vadd.f32 1.0, %v1090_v21  ;;  %1010 = vmatpush3.msra.mxu0 %v455_v50  ;;  %v632_v50 = vld [vmem:[#allocation10 + $0x58] sm:$0xff] }
 0x13c   :  { %v1092_v22 = vpop.eup %1091  ;;  %1103 = vrcp.f32 %v272_v19  ;;  %1011 = vmatprep.subr.mxu0 %v454_v51 }
 0x13d   :  { %v273_v24 = vadd.f32 1.0, %v1092_v22  ;;  %1012 = vmatpush3.msra.mxu0 %v454_v51  ;;  %v631_v51 = vld [vmem:[#allocation10 + $0x50] sm:$0xff] }
 0x13e   :  { %v1094_v25 = vpop.eup %1093  ;;  %1013 = vmatprep.subr.mxu0 %v453_v52 }
 0x13f   :  { %1105 = vrcp.f32 %v273_v24  ;;  %v276_v27 = vadd.f32 1.0, %v1094_v25  ;;  %1014 = vmatpush3.msra.mxu0 %v453_v52  ;;  %v630_v52 = vld [vmem:[#allocation10 + $0x48] sm:$0xff] }
 0x140   :  { %v1096_v26 = vpop.eup %1095  ;;  %1107 = vrcp.f32 %v274_v23 }
 0x141   :  { %v275_v28 = vadd.f32 1.0, %v1096_v26 }
 0x143   :  { %1109 = vrcp.f32 %v275_v28 }
 0x144   :  { %v1098_v29 = vpop.eup %1097  ;;  %1111 = vrcp.f32 %v276_v27 }
 0x145   :  { %v1100_v30 = vpop.eup %1099  ;;  %971 = vmatprep.mubr.f32.mxu1 %v1098_v29 }
 0x146   :  { %972 = vmatmul.mubr.f32.vlgmr.msra.gmra.mxu1 %v1100_v30 }
 0x147   :  { %1028 = vmatpush3.msra.mxu1 %v636_v46 }
 0x148   :  { %v1102_v31 = vpop.eup %1101  ;;  %1029 = vmatprep.subr.mxu1 %v635_v47 }
 0x149   :  { %v1104_v32 = vpop.eup %1103  ;;  %974 = vmatprep.mubr.f32.mxu1 %v1102_v31  ;;  %1030 = vmatpush3.msra.mxu1 %v635_v47 }
 0x14a   :  { %975 = vmatmul.mubr.f32.gmra.mxu1 %v1104_v32  ;;  %1031 = vmatprep.subr.mxu1 %v634_v48 }
 0x14b   :  { %1032 = vmatpush3.msra.mxu1 %v634_v48 }
 0x14c   :  { %v1106_v33 = vpop.eup %1105  ;;  %1033 = vmatprep.subr.mxu1 %v633_v49 }
 0x14d   :  { %v1108_v34 = vpop.eup %1107  ;;  %977 = vmatprep.mubr.f32.mxu1 %v1106_v33  ;;  %1034 = vmatpush3.msra.mxu1 %v633_v49 }
 0x14e   :  { %978 = vmatmul.mubr.f32.gmra.mxu1 %v1108_v34  ;;  %1035 = vmatprep.subr.mxu1 %v632_v50 }
 0x14f   :  { %1036 = vmatpush3.msra.mxu1 %v632_v50 }
 0x150   :  { %v1110_v35 = vpop.eup %1109  ;;  %1037 = vmatprep.subr.mxu1 %v631_v51 }
 0x151   :  { %v1112_v36 = vpop.eup %1111  ;;  %980 = vmatprep.mubr.f32.mxu1 %v1110_v35  ;;  %1038 = vmatpush3.msra.mxu1 %v631_v51 }
 0x152   :  { %981 = vmatmul.mubr.f32.gmra.mxu1 %v1112_v36  ;;  %1039 = vmatprep.subr.mxu1 %v630_v52 }
 0x153   :  { %1040 = vmatpush3.msra.mxu1 %v630_v52 }
 0x206   :  { %v973_v54 = vpop.f32.mrf.mxu1 }
 0x207   :  { %v380_v55 = vadd.f32 %v973_v54, %v777_v53  ;;  %v628_v54 = vld [vmem:[#allocation10 + $0x38] sm:$0xff] }
 0x208   :  { %v374_v56 = vpop.f32.mrf.mxu1 }
 0x209   :  { %v414_v57 = vsub.f32 0.0, %v380_v55  ;;  %v375_v58 = vadd.f32 %v777_v53, %v374_v56  ;;  %v627_v55 = vld [vmem:[#allocation10 + $0x30] sm:$0xff]  ;;  %v626_v56 = vld [vmem:[#allocation10 + $0x28] sm:$0xff] }
 0x20a   :  { %v976_v59 = vpop.f32.mrf.mxu1 }
 0x20b   :  { %v423_v60 = vmul.f32 1.442695, %v414_v57  ;;  %v413_v61 = vsub.f32 0.0, %v375_v58  ;;  %v390_v62 = vadd.f32 %v976_v59, %v777_v53  ;;  %v625_v57 = vld [vmem:[#allocation10 + $0x20] sm:$0xff]  ;;  %v624_v58 = vld [vmem:[#allocation10 + $0x18] sm:$0xff]  ;;  %v623_v59 = vld [vmem:[#allocation10 + $0x10] sm:$0xff] }
 0x20c   :  { %v384_v63 = vpop.f32.mrf.mxu1 }
 0x20d   :  { %1113 = vpow2.f32 %v423_v60  ;;  %v421_v0 = vmul.f32 1.442695, %v413_v61  ;;  %v416_v1 = vsub.f32 0.0, %v390_v62  ;;  %v385_v2 = vadd.f32 %v777_v53, %v384_v63  ;;  %v622_v60 = vld [vmem:[#allocation10 + $0x8] sm:$0xff]  ;;  %v621_v61 = vld [vmem:[#allocation10] sm:$0xff] }
 0x20e   :  { %v979_v3 = vpop.f32.mrf.mxu1  ;;  %v778_v62 = vld [vmem:[%s1416_s6] ss:$0 sm:$0xff] }
 0x20f   :  { %1115 = vpow2.f32 %v421_v0  ;;  %v427_v4 = vmul.f32 1.442695, %v416_v1  ;;  %v415_v5 = vsub.f32 0.0, %v385_v2  ;;  %v400_v6 = vadd.f32 %v979_v3, %v777_v53 }
 0x210   :  { %v394_v7 = vpop.f32.mrf.mxu1 }
 0x211   :  { %1117 = vpow2.f32 %v427_v4  ;;  %v425_v8 = vmul.f32 1.442695, %v415_v5  ;;  %v418_v9 = vsub.f32 0.0, %v400_v6  ;;  %v395_v10 = vadd.f32 %v777_v53, %v394_v7 }
 0x212   :  { %v982_v11 = vpop.f32.mrf.mxu1 }
 0x213   :  { %1119 = vpow2.f32 %v425_v8  ;;  %v431_v12 = vmul.f32 1.442695, %v418_v9  ;;  %v417_v13 = vsub.f32 0.0, %v395_v10  ;;  %v410_v14 = vadd.f32 %v982_v11, %v777_v53 }
 0x214   :  { %v404_v15 = vpop.f32.mrf.mxu1 }
 0x215   :  { %1121 = vpow2.f32 %v431_v12  ;;  %v429_v16 = vmul.f32 1.442695, %v417_v13  ;;  %v420_v17 = vsub.f32 0.0, %v410_v14  ;;  %v405_v18 = vadd.f32 %v777_v53, %v404_v15  ;;  %v629_v53 = vld [vmem:[#allocation10 + $0x40] sm:$0xff] }
 0x216   :  { %1041 = vmatprep.subr.mxu1 %v629_v53 }
 0x217   :  { %1123 = vpow2.f32 %v429_v16  ;;  %v435_v19 = vmul.f32 1.442695, %v420_v17  ;;  %v419_v20 = vsub.f32 0.0, %v405_v18  ;;  %1042 = vmatpush3.msra.mxu1 %v629_v53 }
 0x218   :  { %1043 = vmatprep.subr.mxu1 %v628_v54 }
 0x219   :  { %1125 = vpow2.f32 %v435_v19  ;;  %v433_v21 = vmul.f32 1.442695, %v419_v20  ;;  %1044 = vmatpush3.msra.mxu1 %v628_v54 }
 0x21a   :  { %v1114_v22 = vpop.eup %1113  ;;  %1045 = vmatprep.subr.mxu1 %v627_v55 }
 0x21b   :  { %1127 = vpow2.f32 %v433_v21  ;;  %v438_v24 = vadd.f32 1.0, %v1114_v22  ;;  %1046 = vmatpush3.msra.mxu1 %v627_v55  ;;  %v779_v55 = vld [vmem:[%s1418_s8] ss:$0 sm:$0xff]  ;;  %s762_s8 = sshll.u32 %s1314_s19, 4  ;;  %s763_s8 = int_to_ptr.vmem [resolvable:$true] %s762_s8 }
 0x21c   :  { %v1116_v23 = vpop.eup %1115  ;;  %1047 = vmatprep.subr.mxu1 %v626_v56  ;;  %s1277_s20 = scalar_lea.vmem %s763_s8, 1024  ;;  %p1282_p12 = scmp.lt.s32.totalorder %s763_s8, %s763_s8 }
 0x21d   :  { %v437_v25 = vadd.f32 1.0, %v1116_v23  ;;  %1048 = vmatpush3.msra.mxu1 %v626_v56  ;;  %p1278_p11 = scmp.ne.s32.totalorder %s763_s8, %s1277_s20  ;;  %p1283_p13 = scmp.lt.s32.totalorder %s1277_s20, %s1277_s20 }
 0x21e   :  { %v1118_v26 = vpop.eup %1117  ;;  %1049 = vmatprep.subr.mxu1 %v625_v57 }
 0x21f   :  { %1129 = vrcp.f32 %v437_v25  ;;  %v440_v28 = vadd.f32 1.0, %v1118_v26  ;;  %1050 = vmatpush3.msra.mxu1 %v625_v57  ;;  %p1284_p0 = por %p1283_p13, %p1282_p12 }
 0x220   :  { %v1120_v27 = vpop.eup %1119  ;;  %1131 = vrcp.f32 %v438_v24  ;;  %1051 = vmatprep.subr.mxu1 %v624_v58 }
 0x221   :  { %v439_v29 = vadd.f32 1.0, %v1120_v27  ;;  %1052 = vmatpush3.msra.mxu1 %v624_v58  ;;  %p1285_p1 = pnand %p1284_p0, %p1278_p11 }
 0x222   :  { %v1122_v30 = vpop.eup %1121  ;;  %1053 = vmatprep.subr.mxu1 %v623_v59 }
 0x223   :  { %1133 = vrcp.f32 %v439_v29  ;;  %v442_v32 = vadd.f32 1.0, %v1122_v30  ;;  %1054 = vmatpush3.msra.mxu1 %v623_v59 }
 0x224   :  { %v1124_v31 = vpop.eup %1123  ;;  %1135 = vrcp.f32 %v440_v28  ;;  %1055 = vmatprep.subr.mxu1 %v622_v60 }
 0x225   :  { %v441_v33 = vadd.f32 1.0, %v1124_v31  ;;  %1056 = vmatpush3.msra.mxu1 %v622_v60 }
 0x226   :  { %v1126_v34 = vpop.eup %1125  ;;  %1057 = vmatprep.subr.mxu1 %v621_v61 }
 0x227   :  { %1137 = vrcp.f32 %v441_v33  ;;  %v444_v36 = vadd.f32 1.0, %v1126_v34  ;;  %1058 = vmatpush3.msra.mxu1 %v621_v61 }
 0x228   :  { %v1128_v35 = vpop.eup %1127  ;;  %1139 = vrcp.f32 %v442_v32 }
 0x229   :  { %v443_v37 = vadd.f32 1.0, %v1128_v35 }
 0x22b   :  { %1141 = vrcp.f32 %v443_v37 }
 0x22c   :  { %v1130_v38 = vpop.eup %1129  ;;  %1143 = vrcp.f32 %v444_v36 }
 0x22d   :  { %v1132_v39 = vpop.eup %1131  ;;  %1015 = vmatprep.mubr.f32.mxu0 %v1130_v38 }
 0x22e   :  { %1016 = vmatmul.mubr.f32.vlgmr.msra.gmra.mxu0 %v1132_v39 }
 0x230   :  { %v1134_v40 = vpop.eup %1133 }
 0x231   :  { %v1136_v41 = vpop.eup %1135  ;;  %1018 = vmatprep.mubr.f32.mxu0 %v1134_v40 }
 0x232   :  { %1019 = vmatmul.mubr.f32.gmra.mxu0 %v1136_v41 }
 0x234   :  { %v1138_v42 = vpop.eup %1137 }
 0x235   :  { %v1140_v43 = vpop.eup %1139  ;;  %1021 = vmatprep.mubr.f32.mxu0 %v1138_v42 }
 0x236   :  { %1022 = vmatmul.mubr.f32.gmra.mxu0 %v1140_v43 }
 0x238   :  { %v1142_v44 = vpop.eup %1141 }
 0x239   :  { %v1144_v45 = vpop.eup %1143  ;;  %1024 = vmatprep.mubr.f32.mxu0 %v1142_v44 }
 0x23a   :  { %1025 = vmatmul.mubr.f32.gmra.mxu0 %v1144_v45 }
 0x2ee   :  { %v1017_v63 = vpop.f32.mrf.mxu0 }
 0x2ef   :  { %v548_v0 = vadd.f32 %v1017_v63, %v778_v62 }
 0x2f0   :  { %v542_v1 = vpop.f32.mrf.mxu0 }
 0x2f1   :  { %v582_v2 = vsub.f32 0.0, %v548_v0  ;;  %v543_v3 = vadd.f32 %v778_v62, %v542_v1 }
 0x2f2   :  { %v1020_v4 = vpop.f32.mrf.mxu0 }
 0x2f3   :  { %v591_v5 = vmul.f32 1.442695, %v582_v2  ;;  %v581_v6 = vsub.f32 0.0, %v543_v3  ;;  %v558_v7 = vadd.f32 %v1020_v4, %v778_v62 }
 0x2f4   :  { %v552_v8 = vpop.f32.mrf.mxu0 }
 0x2f5   :  { %1145 = vpow2.f32 %v591_v5  ;;  %v589_v9 = vmul.f32 1.442695, %v581_v6  ;;  %v584_v10 = vsub.f32 0.0, %v558_v7  ;;  %v553_v11 = vadd.f32 %v778_v62, %v552_v8 }
 0x2f6   :  { %v1023_v12 = vpop.f32.mrf.mxu0 }
 0x2f7   :  { %1147 = vpow2.f32 %v589_v9  ;;  %v595_v13 = vmul.f32 1.442695, %v584_v10  ;;  %v583_v14 = vsub.f32 0.0, %v553_v11  ;;  %v568_v15 = vadd.f32 %v1023_v12, %v778_v62 }
 0x2f8   :  { %v562_v16 = vpop.f32.mrf.mxu0 }
 0x2f9   :  { %1149 = vpow2.f32 %v595_v13  ;;  %v593_v17 = vmul.f32 1.442695, %v583_v14  ;;  %v586_v18 = vsub.f32 0.0, %v568_v15  ;;  %v563_v19 = vadd.f32 %v778_v62, %v562_v16 }
 0x2fa   :  { %v1026_v20 = vpop.f32.mrf.mxu0 }
 0x2fb   :  { %1151 = vpow2.f32 %v593_v17  ;;  %v599_v21 = vmul.f32 1.442695, %v586_v18  ;;  %v585_v22 = vsub.f32 0.0, %v563_v19  ;;  %v578_v23 = vadd.f32 %v1026_v20, %v778_v62 }
 0x2fc   :  { %v572_v24 = vpop.f32.mrf.mxu0 }
 0x2fd   :  { %1153 = vpow2.f32 %v599_v21  ;;  %v597_v25 = vmul.f32 1.442695, %v585_v22  ;;  %v588_v26 = vsub.f32 0.0, %v578_v23  ;;  %v573_v27 = vadd.f32 %v778_v62, %v572_v24 }
 0x2ff   :  { %1155 = vpow2.f32 %v597_v25  ;;  %v603_v28 = vmul.f32 1.442695, %v588_v26  ;;  %v587_v29 = vsub.f32 0.0, %v573_v27 }
 0x301   :  { %1157 = vpow2.f32 %v603_v28  ;;  %v601_v30 = vmul.f32 1.442695, %v587_v29 }
 0x302   :  { %v1146_v31 = vpop.eup %1145 }
 0x303   :  { %1159 = vpow2.f32 %v601_v30  ;;  %v606_v33 = vadd.f32 1.0, %v1146_v31 }
 0x304   :  { %v1148_v32 = vpop.eup %1147 }
 0x305   :  { %v605_v34 = vadd.f32 1.0, %v1148_v32 }
 0x306   :  { %v1150_v35 = vpop.eup %1149 }
 0x307   :  { %1161 = vrcp.f32 %v605_v34  ;;  %v608_v37 = vadd.f32 1.0, %v1150_v35 }
 0x308   :  { %v1152_v36 = vpop.eup %1151  ;;  %1163 = vrcp.f32 %v606_v33 }
 0x309   :  { %v607_v38 = vadd.f32 1.0, %v1152_v36 }
 0x30a   :  { %v1154_v39 = vpop.eup %1153 }
 0x30b   :  { %1165 = vrcp.f32 %v607_v38  ;;  %v610_v41 = vadd.f32 1.0, %v1154_v39 }
 0x30c   :  { %v1156_v40 = vpop.eup %1155  ;;  %1167 = vrcp.f32 %v608_v37 }
 0x30d   :  { %v609_v42 = vadd.f32 1.0, %v1156_v40 }
 0x30e   :  { %v1158_v43 = vpop.eup %1157 }
 0x30f   :  { %1169 = vrcp.f32 %v609_v42  ;;  %v612_v45 = vadd.f32 1.0, %v1158_v43 }
 0x310   :  { %v1160_v44 = vpop.eup %1159  ;;  %1171 = vrcp.f32 %v610_v41 }
 0x311   :  { %v611_v46 = vadd.f32 1.0, %v1160_v44 }
 0x313   :  { %1173 = vrcp.f32 %v611_v46 }
 0x314   :  { %v1162_v47 = vpop.eup %1161  ;;  %1175 = vrcp.f32 %v612_v45 }
 0x315   :  { %v1164_v48 = vpop.eup %1163  ;;  %1059 = vmatprep.mubr.f32.mxu1 %v1162_v47 }
 0x316   :  { %1060 = vmatmul.mubr.f32.vlgmr.msra.gmra.mxu1 %v1164_v48 }
 0x318   :  { %v1166_v49 = vpop.eup %1165 }
 0x319   :  { %v1168_v50 = vpop.eup %1167  ;;  %1062 = vmatprep.mubr.f32.mxu1 %v1166_v49 }
 0x31a   :  { %1063 = vmatmul.mubr.f32.gmra.mxu1 %v1168_v50 }
 0x31c   :  { %v1170_v51 = vpop.eup %1169 }
 0x31d   :  { %v1172_v52 = vpop.eup %1171  ;;  %1065 = vmatprep.mubr.f32.mxu1 %v1170_v51 }
 0x31e   :  { %1066 = vmatmul.mubr.f32.gmra.mxu1 %v1172_v52 }
 0x320   :  { %v1174_v53 = vpop.eup %1173 }
 0x321   :  { %v1176_v54 = vpop.eup %1175  ;;  %1068 = vmatprep.mubr.f32.mxu1 %v1174_v53 }
 0x322   :  { %1069 = vmatmul.mubr.f32.gmra.mxu1 %v1176_v54 }
 0x3d6   :  { %v1061_v56 = vpop.f32.mrf.mxu1 }
 0x3d7   :  { %v716_v57 = vadd.f32 %v1061_v56, %v779_v55 }
 0x3d8   :  { %v710_v58 = vpop.f32.mrf.mxu1 }
 0x3d9   :  { %750 = vst [vmem:[#allocation11 + $0x8] sm:$0xff] %v716_v57  ;;  %v711_v59 = vadd.f32 %v779_v55, %v710_v58 }
 0x3da   :  { %v1064_v60 = vpop.f32.mrf.mxu1 }
 0x3db   :  { %749 = vst [vmem:[#allocation11] sm:$0xff] %v711_v59  ;;  %v726_v61 = vadd.f32 %v1064_v60, %v779_v55 }
 0x3dc   :  { %v720_v62 = vpop.f32.mrf.mxu1 }
 0x3dd   :  { %752 = vst [vmem:[#allocation11 + $0x18] sm:$0xff] %v726_v61  ;;  %v721_v63 = vadd.f32 %v779_v55, %v720_v62 }
 0x3de   :  { %v1067_v0 = vpop.f32.mrf.mxu1 }
 0x3df   :  { %751 = vst [vmem:[#allocation11 + $0x10] sm:$0xff] %v721_v63  ;;  %v736_v1 = vadd.f32 %v1067_v0, %v779_v55 }
 0x3e0   :  { %v730_v2 = vpop.f32.mrf.mxu1 }
 0x3e1   :  { %754 = vst [vmem:[#allocation11 + $0x28] sm:$0xff] %v736_v1  ;;  %v731_v3 = vadd.f32 %v779_v55, %v730_v2 }
 0x3e2   :  { %v1070_v4 = vpop.f32.mrf.mxu1 }
 0x3e3   :  { %753 = vst [vmem:[#allocation11 + $0x20] sm:$0xff] %v731_v3  ;;  %v746_v5 = vadd.f32 %v1070_v4, %v779_v55 }
 0x3e4   :  { %v740_v6 = vpop.f32.mrf.mxu1 }
 0x3e5   :  { %756 = vst [vmem:[#allocation11 + $0x38] sm:$0xff] %v746_v5  ;;  %v741_v7 = vadd.f32 %v779_v55, %v740_v6 }
 0x3e7   :  { %755 = vst [vmem:[#allocation11 + $0x30] sm:$0xff] %v741_v7 }
 0x3e8   :  { %1288 = shalt.err (!%p1285_p1)
}
 0x3e9   :  { %768 = dma.vmem_to_hbm [thread:$0]  %s763_s8, 1024, %s1419_s9, [#allocation4], %s1306_s12, %s1306_s12, %s1307_s13  }
 0x3ea   :  { %1303 = dma.done.wait [#allocation4], 1024  }
 0x3eb   :  { %1304 = vsyncadd [#allocation4], 4294966272 }
 0x3ec   :  { %772 = vsyncpa [#allocation3], 1 }
 0x3ed   :  { %773 = vsyncpa [#allocation6], 1 }
 0x3ee   :  { %774 = vsyncpa [#allocation9], 1 }
 0x3ef   :  { %775 = vsyncpa [#allocation4], 1 }

</bundles_post_ra>
